<compile_context>
chip_gen: v7x
topology: tpu7x:2x2x1
jax: 0.10.0
libtpu: 0.0.40
codegen_flags: <defaults>
</compile_context>

<pallas_src>
import functools

import jax
import jax.numpy as jnp
from jax.experimental import pallas as pl
from jax.experimental.pallas import tpu as pltpu

_EPS = 1e-5  # torch.nn.LayerNorm default


# --------------------------------------------------------------------------- #
# Sizing helpers
# --------------------------------------------------------------------------- #
def _round_down(v, m):
    return max(m, (v // m) * m)


def _round_up(v, m):
    return ((v + m - 1) // m) * m


def _cdiv(a, b):
    return (a + b - 1) // b


def _vmem_capacity_bytes():
    try:
        cap = getattr(pltpu.get_tpu_info(), "vmem_capacity_bytes", None)
        if cap:
            return int(cap)
    except Exception:
        pass
    return 64 << 20  # conservative fallback: smallest per-TC VMEM (v7x)


def _pick_bm(B, n_lanes, itemsize, *, block_budget_bytes):
    """Row-tile height: ~1-2 MiB blocks, but a deep enough grid for pipelining."""
    sub = max(8, 32 // max(1, itemsize))  # sublane packing: 8 f32, 16 bf16
    if B <= sub:
        return B                          # full-extent block dim is always legal
    row_bytes = max(1, n_lanes * itemsize)
    bm = int(max(sub, block_budget_bytes // row_bytes))
    bm = _round_down(min(bm, B), sub)
    # Deepen the grid when B allows: >=4 (ideally 8, even) steps so each v7x
    # TensorCore owns >=2 blocks (its own double-buffering) and the two cores
    # split the rows evenly; also keeps v5e/v6e's DMA pipeline full.
    max_blocks = B // sub
    want = min(8, max_blocks)
    if want > 2 and want % 2 == 1:
        want -= 1                          # prefer an even split across 2 TCs
    if want >= 2:
        bm = min(bm, _round_down(_cdiv(B, want), sub))
    return max(sub, bm)


def _single_pass_ws(bm, n_lanes, x_isz, o_isz, p_isz):
    """VMEM working-set estimate for the single row-block kernel."""
    blk = bm * n_lanes
    return (2 * blk * x_isz        # double-buffered input blocks
            + 2 * blk * o_isz      # double-buffered output blocks
            + 2 * n_lanes * p_isz  # phi[t] block (allocated double-buffered)
            + 3 * blk * 4)         # compiler f32 temporaries (cast + elemwise)


# --------------------------------------------------------------------------- #
# Kernels
# --------------------------------------------------------------------------- #
def _xdav2_kernel(t_ref, x_ref, phi_ref, o_ref, *, n_true):
    # One (bm, Np) row block; Np is the full (lane-padded) feature width, so the
    # whole reduction axis is resident.  sum / sum-of-squares in one pass: the
    # only full-block VMEM store is the output itself (no centered temp).
    del t_ref                                        # consumed by the index_maps
    x = x_ref[...].astype(jnp.float32)
    inv_n = jnp.float32(1.0 / n_true)                # true (unpadded) feature count
    s1 = jnp.sum(x, axis=-1, keepdims=True)          # zero padding -> sums unaffected
    s2 = jnp.sum(x * x, axis=-1, keepdims=True)
    mean = s1 * inv_n
    var = jnp.maximum(s2 * inv_n - mean * mean, 0.0)  # biased var (torch LN)
    rstd = jax.lax.rsqrt(var + _EPS)
    phi = phi_ref[0].astype(jnp.float32)             # (1, Np), broadcasts over rows
    y = (x - mean) * rstd - phi
    o_ref[...] = jnp.maximum(y, 0.0).astype(o_ref.dtype)


def _stats_kernel(x_ref, mean_ref, rstd_ref, *, n_true):
    # Pass 1 of the N-tiled path: accumulate per-row sum / sumsq across N tiles
    # (outputs are resident across the "arbitrary" N axis), then finalize to
    # mean and rsqrt(var + eps) on the last tile.
    j = pl.program_id(1)

    @pl.when(j == 0)
    def _():
        mean_ref[...] = jnp.zeros_like(mean_ref)
        rstd_ref[...] = jnp.zeros_like(rstd_ref)

    x = x_ref[...].astype(jnp.float32)
    mean_ref[...] += jnp.sum(x, axis=-1, keepdims=True)        # s1
    rstd_ref[...] += jnp.sum(x * x, axis=-1, keepdims=True)    # s2

    @pl.when(j == pl.num_programs(1) - 1)
    def _():
        inv_n = jnp.float32(1.0 / n_true)
        m = mean_ref[...] * inv_n
        var = jnp.maximum(rstd_ref[...] * inv_n - m * m, 0.0)
        mean_ref[...] = m
        rstd_ref[...] = jax.lax.rsqrt(var + _EPS)


def _apply_kernel(t_ref, x_ref, mean_ref, rstd_ref, phi_ref, o_ref):
    # Pass 2 of the N-tiled path: normalize with precomputed stats, shift, ReLU.
    del t_ref
    x = x_ref[...].astype(jnp.float32)
    y = (x - mean_ref[...]) * rstd_ref[...] - phi_ref[0].astype(jnp.float32)
    o_ref[...] = jnp.maximum(y, 0.0).astype(o_ref.dtype)


# --------------------------------------------------------------------------- #
# Wrapper
# --------------------------------------------------------------------------- #
def xdav2_forward(x, phi, t=0, *, bm=None, block_budget_bytes=(3 << 19),
                  force_two_pass=False, tn=None):
    """x: (B, *feat) e.g. NCHW; phi: (T, *feat). Returns max(LayerNorm(x) - phi[t], 0)."""
    assert x.shape[1:] == phi.shape[1:], "phi per-task shape must match x feature shape"
    B = x.shape[0]
    T = phi.shape[0]
    N = 1
    for d in x.shape[1:]:
        N *= d
    if isinstance(t, int):
        assert 0 <= t < T, f"task index t={t} out of range [0, {T})"

    x_isz = jnp.dtype(x.dtype).itemsize
    o_isz = x_isz
    p_isz = jnp.dtype(phi.dtype).itemsize
    sub = max(8, 32 // max(1, x_isz))

    cap = _vmem_capacity_bytes()
    budget_cap = int(0.70 * cap)           # keep well under v7x's 64 MiB

    x2 = x.reshape(B, N)
    phi2 = phi.reshape(T, 1, N)

    # Task index: scalar-prefetched; clipped so a bad dynamic t cannot index OOB.
    t_arr = jnp.clip(jnp.asarray([t], dtype=jnp.int32), 0, T - 1)

    n128 = _round_up(N, 128)
    min_bm = B if B <= sub else sub
    single_pass_ok = (not force_two_pass) and (
        _single_pass_ws(min_bm, n128, x_isz, o_isz, p_isz) <= budget_cap)

    if single_pass_ok:
        # ---------------- Single-pass path: full feature width per block ------ #
        Np = n128
        if Np != N:
            # Lane-dense last dim: zero-pad to a multiple of 128 so stores are
            # unmasked vst; zeros don't perturb the sums (mean uses true N).
            x2p = jnp.pad(x2, ((0, 0), (0, Np - N)))
            phi2p = jnp.pad(phi2, ((0, 0), (0, 0), (0, Np - N)))
        else:
            x2p, phi2p = x2, phi2

        bm_eff = bm if bm is not None else _pick_bm(
            B, Np, x_isz, block_budget_bytes=block_budget_bytes)
        bm_eff = min(bm_eff, B)
        # Shrink if the estimated working set (incl. f32 temps) crowds VMEM.
        while bm_eff > sub and _single_pass_ws(bm_eff, Np, x_isz, o_isz, p_isz) > budget_cap:
            bm_eff = _round_down(bm_eff // 2, sub)

        ws = _single_pass_ws(bm_eff, Np, x_isz, o_isz, p_isz)
        vmem_limit = int(min(0.75 * cap, max(32 << 20, 2 * ws)))

        grid = (_cdiv(B, bm_eff),)
        out = pl.pallas_call(
            functools.partial(_xdav2_kernel, n_true=N),
            out_shape=jax.ShapeDtypeStruct((B, Np), x.dtype),
            grid_spec=pltpu.PrefetchScalarGridSpec(
                num_scalar_prefetch=1,
                grid=grid,
                in_specs=[
                    pl.BlockSpec((bm_eff, Np), lambda i, t_ref: (i, 0)),          # rows of x
                    pl.BlockSpec((1, 1, Np), lambda i, t_ref: (t_ref[0], 0, 0)),  # phi[t]
                ],
                out_specs=pl.BlockSpec((bm_eff, Np), lambda i, t_ref: (i, 0)),
            ),
            compiler_params=pltpu.CompilerParams(
                dimension_semantics=("parallel",),
                vmem_limit_bytes=vmem_limit,
            ),
        )(t_arr, x2p, phi2p)

        out = out[:, :N] if Np != N else out
        return out.reshape(x.shape)

    # ---------------- N-tiled two-pass path (very large C*H*W / v7x) --------- #
    if tn is None:
        tn = min(n128, max(128, _round_down(block_budget_bytes // (64 * x_isz), 128)))
    tn = min(_round_up(tn, 128), n128)
    Np = _round_up(N, tn)                  # no partial N tiles -> sums stay exact
    if Np != N:
        x2p = jnp.pad(x2, ((0, 0), (0, Np - N)))
        phi2p = jnp.pad(phi2, ((0, 0), (0, 0), (0, Np - N)))
    else:
        x2p, phi2p = x2, phi2

    bm_eff = bm if bm is not None else _pick_bm(
        B, tn, x_isz, block_budget_bytes=block_budget_bytes)
    bm_eff = min(bm_eff, B)
    row_steps = _cdiv(B, bm_eff)
    n_steps = Np // tn
    vmem_limit = int(min(0.75 * cap, max(32 << 20, 8 * bm_eff * tn * 4)))

    # Pass 1: per-row mean and rsqrt(var + eps), accumulated across N tiles.
    mean_r, rstd_r = pl.pallas_call(
        functools.partial(_stats_kernel, n_true=N),
        out_shape=(jax.ShapeDtypeStruct((B, 1), jnp.float32),
                   jax.ShapeDtypeStruct((B, 1), jnp.float32)),
        grid_spec=pltpu.PrefetchScalarGridSpec(
            num_scalar_prefetch=0,
            grid=(row_steps, n_steps),
            in_specs=[pl.BlockSpec((bm_eff, tn), lambda i, j: (i, j))],
            out_specs=[pl.BlockSpec((bm_eff, 1), lambda i, j: (i, 0)),
                       pl.BlockSpec((bm_eff, 1), lambda i, j: (i, 0))],
        ),
        compiler_params=pltpu.CompilerParams(
            dimension_semantics=("parallel", "arbitrary"),
            vmem_limit_bytes=vmem_limit,
        ),
    )(x2p)

    # Pass 2: normalize with the precomputed stats, subtract phi[t], ReLU.
    out = pl.pallas_call(
        _apply_kernel,
        out_shape=jax.ShapeDtypeStruct((B, Np), x.dtype),
        grid_spec=pltpu.PrefetchScalarGridSpec(
            num_scalar_prefetch=1,
            grid=(row_steps, n_steps),
            in_specs=[
                pl.BlockSpec((bm_eff, tn), lambda i, j, t_ref: (i, j)),
                pl.BlockSpec((bm_eff, 1), lambda i, j, t_ref: (i, 0)),
                pl.BlockSpec((bm_eff, 1), lambda i, j, t_ref: (i, 0)),
                pl.BlockSpec((1, 1, tn), lambda i, j, t_ref: (t_ref[0], 0, j)),
            ],
            out_specs=pl.BlockSpec((bm_eff, tn), lambda i, j, t_ref: (i, j)),
        ),
        compiler_params=pltpu.CompilerParams(
            dimension_semantics=("parallel", "parallel"),
            vmem_limit_bytes=vmem_limit,
        ),
    )(t_arr, x2p, mean_r, rstd_r, phi2p)

    out = out[:, :N] if Np != N else out
    return out.reshape(x.shape)


# --------------------------------------------------------------------------- #
# Reference & self-test
# --------------------------------------------------------------------------- #
def _reference(x, phi, t=0):
    B = x.shape[0]
    xf = x.reshape(B, -1).astype(jnp.float32)
    mean = jnp.mean(xf, axis=-1, keepdims=True)
    var = jnp.mean((xf - mean) ** 2, axis=-1, keepdims=True)
    xn = ((xf - mean) / jnp.sqrt(var + _EPS)).reshape(x.shape)
    return jnp.maximum(xn - phi[t][None], 0.0).astype(x.dtype)


if __name__ == "__main__":
    key = jax.random.PRNGKey(0)
    kx, kp, kx2, kp2 = jax.random.split(key, 4)

    # module param shape = (T, C, H, W); input batch B
    T, C, H, W = 2, 4, 16, 16
    B = 16
    x = jax.random.normal(kx, (B, C, H, W), dtype=jnp.float32)
    phi = 0.1 * jax.random.normal(kp, (T, C, H, W), dtype=jnp.float32)
    ref = _reference(x, phi, t=1)

    # 1) Default single-pass path (lane-aligned N = 1024).
    out = jax.block_until_ready(xdav2_forward(x, phi, t=1))
    assert out.shape == (B, C, H, W)
    assert jnp.allclose(out, ref, atol=5e-5, rtol=5e-5), "single-pass mismatch"

    # 2) N-tiled two-pass path (forced with a small N tile to exercise it).
    out2 = jax.block_until_ready(xdav2_forward(x, phi, t=1, force_two_pass=True, tn=256))
    assert jnp.allclose(out2, ref, atol=5e-5, rtol=5e-5), "two-pass mismatch"

    # 3) Non-lane-aligned feature dim + non-divisible batch (padding / edge blocks).
    B3, C3, H3, W3 = 12, 3, 10, 10                     # N = 300 -> padded to 384
    x3 = jax.random.normal(kx2, (B3, C3, H3, W3), dtype=jnp.float32)
    phi3 = 0.1 * jax.random.normal(kp2, (T, C3, H3, W3), dtype=jnp.float32)
    out3 = jax.block_until_ready(xdav2_forward(x3, phi3, t=0))
    ref3 = _reference(x3, phi3, t=0)
    assert out3.shape == (B3, C3, H3, W3)
    assert jnp.allclose(out3, ref3, atol=5e-5, rtol=5e-5), "padded-path mismatch"

    print("KERNEL_OK")
</pallas_src>

<mosaic_0001>
module attributes {stable_mosaic.version = 11 : i64} {
  func.func @_xdav2_kernel(%arg0: i32, %arg1: memref<1xi32, #tpu.memory_space<smem>>, %arg2: memref<8x1024xf32, #tpu.memory_space<vmem>>, %arg3: memref<1x1x1024xf32, #tpu.memory_space<vmem>>, %arg4: memref<8x1024xf32, #tpu.memory_space<vmem>>) attributes {dimension_semantics = [#tpu.dimension_semantics<parallel>], iteration_bounds = array<i64: 2>, scalar_prefetch = 1 : i64, scratch_operands = 0 : i64, tpu.core_type = #tpu.core_type<tc>, window_params = [{transform_indices = @transform_0, window_bounds = array<i64: 8, 1024>}, {transform_indices = @transform_1, window_bounds = array<i64: 1, 1, 1024>}, {transform_indices = @transform_2, window_bounds = array<i64: 8, 1024>}]} {
    %c0 = arith.constant 0 : index
    %c0_0 = arith.constant 0 : index
    %0 = vector.load %arg2[%c0, %c0_0] : memref<8x1024xf32, #tpu.memory_space<vmem>>, vector<8x1024xf32>
    %cst = arith.constant dense<0.000000e+00> : vector<8xf32>
    %1 = vector.multi_reduction <add>, %0, %cst [1] : vector<8x1024xf32> to vector<8xf32>
    %2 = vector.shape_cast %1 : vector<8xf32> to vector<8x1xf32>
    %3 = arith.mulf %0, %0 : vector<8x1024xf32>
    %cst_1 = arith.constant dense<0.000000e+00> : vector<8xf32>
    %4 = vector.multi_reduction <add>, %3, %cst_1 [1] : vector<8x1024xf32> to vector<8xf32>
    %5 = vector.shape_cast %4 : vector<8xf32> to vector<8x1xf32>
    %cst_2 = arith.constant 9.765625E-4 : f32
    %6 = vector.broadcast %cst_2 : f32 to vector<8x1xf32>
    %7 = arith.mulf %2, %6 : vector<8x1xf32>
    %cst_3 = arith.constant 9.765625E-4 : f32
    %8 = vector.broadcast %cst_3 : f32 to vector<8x1xf32>
    %9 = arith.mulf %5, %8 : vector<8x1xf32>
    %10 = arith.mulf %7, %7 : vector<8x1xf32>
    %11 = arith.subf %9, %10 : vector<8x1xf32>
    %cst_4 = arith.constant 0.000000e+00 : f32
    %12 = vector.broadcast %cst_4 : f32 to vector<8x1xf32>
    %13 = arith.maximumf %11, %12 : vector<8x1xf32>
    %cst_5 = arith.constant 9.99999974E-6 : f32
    %14 = vector.broadcast %cst_5 : f32 to vector<8x1xf32>
    %15 = arith.addf %13, %14 : vector<8x1xf32>
    %16 = math.rsqrt %15 : vector<8x1xf32>
    %c0_6 = arith.constant 0 : index
    %c0_7 = arith.constant 0 : index
    %c0_8 = arith.constant 0 : index
    %17 = vector.load %arg3[%c0_6, %c0_7, %c0_8] : memref<1x1x1024xf32, #tpu.memory_space<vmem>>, vector<1x1x1024xf32>
    %18 = vector.shape_cast %17 : vector<1x1x1024xf32> to vector<1x1024xf32>
    %19 = vector.broadcast %7 : vector<8x1xf32> to vector<8x1024xf32>
    %20 = arith.subf %0, %19 : vector<8x1024xf32>
    %21 = vector.broadcast %16 : vector<8x1xf32> to vector<8x1024xf32>
    %22 = arith.mulf %20, %21 : vector<8x1024xf32>
    %23 = vector.broadcast %18 : vector<1x1024xf32> to vector<8x1024xf32>
    %24 = arith.subf %22, %23 : vector<8x1024xf32>
    %cst_9 = arith.constant 0.000000e+00 : f32
    %25 = vector.broadcast %cst_9 : f32 to vector<8x1024xf32>
    %26 = arith.maximumf %24, %25 : vector<8x1024xf32>
    %c0_10 = arith.constant 0 : index
    %c0_11 = arith.constant 0 : index
    %27 = vector.load %arg4[%c0_10, %c0_11] : memref<8x1024xf32, #tpu.memory_space<vmem>>, vector<8x1024xf32>
    tpu.vector_store %arg4[%c0_10, %c0_11], %26 {strides = array<i32>} : memref<8x1024xf32, #tpu.memory_space<vmem>>, vector<8x1024xf32>,
    return
  }
  func.func @transform_0(%arg0: i32, %arg1: memref<1xi32, #tpu.memory_space<smem>>) -> (i32, i32) {
    %c0_i32 = arith.constant 0 : i32
    %c0_i32_0 = arith.constant 0 : i32
    return %arg0, %c0_i32 : i32, i32
  }
  func.func @transform_1(%arg0: i32, %arg1: memref<1xi32, #tpu.memory_space<smem>>) -> (i32, i32, i32) {
    %c0 = arith.constant 0 : index
    %0 = memref.load %arg1[%c0] : memref<1xi32, #tpu.memory_space<smem>>
    %c0_i32 = arith.constant 0 : i32
    %c0_i32_0 = arith.constant 0 : i32
    %c0_i32_1 = arith.constant 0 : i32
    return %0, %c0_i32, %c0_i32_0 : i32, i32, i32
  }
  func.func @transform_2(%arg0: i32, %arg1: memref<1xi32, #tpu.memory_space<smem>>) -> (i32, i32) {
    %c0_i32 = arith.constant 0 : i32
    %c0_i32_0 = arith.constant 0 : i32
    return %arg0, %c0_i32 : i32, i32
  }
}

</mosaic_0001>

<bundles_post_ra>
// kernel: tpu_custom_call.1
= control target key start
LH: loop header
LB: loop body
LE: loop exit
PB: predicated region body
PF: predicated region fallthrough
CT: control target
= control target key end

     0   :  { %s925_s0 = inlined_call_operand.<no memory space> [shape: s32[1], index: 0, kind: input, shape index: {}]   ;;  %s926_s1 = inlined_call_operand.hbm [shape: f32[16,1024], index: 1, kind: input, shape index: {}]   ;;  %s927_s2 = inlined_call_operand.hbm [shape: f32[2,1,1024], index: 2, kind: input, shape index: {}]   ;;  %s928_s3 = inlined_call_operand.hbm [shape: f32[16,1024], index: 3, kind: output, shape index: {}]  }
   0x1   :  { %8 = sst [smem:[#allocation3]] %s925_s0 }
   0x2   :  { %9 = vsyncpa [#allocation5], 0 }
   0x3   :  { %11 = vsyncpa [#allocation5 + $0x1], 0 }
   0x4   :  { %12 = vsyncpa [#allocation8], 0 }
   0x5   :  { %13 = vsyncpa [#allocation6], 0 }
   0x6   :  { %15 = vsyncpa [#allocation6 + $0x1], 0  ;;  %s683_s14 = smov 0   ;;  %s685_s15 = smov 0  }
   0x7   :  { %s687_s16 = smov 0   ;;  %s689_s17 = smov 0  }
   0x8   :  { %s691_s18 = smov 0   ;;  %s693_s19 = smov 0  }
   0x9 LB: > { %s712_s0 = sadd.s32 4294967295, %s655_s19   ;;  %s407_s20 = sadd.s32 4294967294, %s655_s19   ;;  %s655_s19 = sphi %s693_s19, %s950_s19   ;;  %s651_s18 = sphi %s691_s18, %s949_s18   ;;  %s647_s17 = sphi %s689_s17, %s948_s17   ;;  %s643_s16 = sphi %s687_s16, %s947_s16   ;;  %s639_s15 = sphi %s685_s15, %s911_s15   ;;  %s635_s14 = sphi %s683_s14, %s946_s14  }
   0xa   : > { %p41_p0 = scmp.ne.s32.totalorder %s647_s17, %s643_s16  ;;  %p42_p1 = scmp.eq.s32.totalorder %s712_s0, 0 }
   0xb   : > { %s51_s21 = sld [smem:[#allocation3]]  ;;  %p69_p3 = scmp.ne.s32.totalorder %s639_s15, %s635_s14 }
   0xc   : > { %p718_p2 = por %p42_p1, %p41_p0  ;;  %p99_p5 = scmp.eq.s32.totalorder %s407_s20, 1 }
   0xd   : > { %p724_p6 = por %p69_p3, %p42_p1  ;;  %p408_p7 = scmp.ge.s32.totalorder %s655_s19, 1 }
   0xe   : > { %s933_s22 = scalar_select %p718_p2, 1, 0 }
   0xf   : > { %s934_s23 = scalar_select %p724_p6, 1, 0 }
  0x10   : > { %p729_p8 = por %p99_p5, %p41_p0  ;;  %p106_p9 = scmp.lt.s32.totalorder %s655_s19, 3 }
  0x11   : > { %s423_s26 = sshll.u32 %s51_s21, 7  ;;  %s657_s30 = smov [#allocation7]  }
  0x12   : > { %s935_s24 = scalar_select %p729_p8, 1, 0 }
  0x13   : > { %p735_p11 = pnand %p408_p7, %p106_p9  ;;  %s121_s29 = scalar_lea.hbm %s927_s2, %s423_s26 }
  0x14   : > { %s123_s4 = sshll.u32 %s657_s30, 4  ;;  %s505_s6 = scalar_lea.hbm %s121_s29, 128  ;;  %s124_s4 = int_to_ptr.vmem [resolvable:$true] %s123_s4 }
  0x15   : > { %s936_s25 = scalar_select %p735_p11, 1, 0 }
  0x16   : > { %p432_p12 = pneg %p735_p11  ;;  %p506_p0 = scmp.ne.s32.totalorder %s121_s29, %s505_s6 }
  0x17   : > { %s510_s9 = scalar_lea.hbm %s927_s2, 256  ;;  %p511_p7 = scmp.lt.u32.totalorder %s121_s29, %s927_s2 }
  0x18   : > { %p746_p13 = pnand %p432_p12, %p724_p6  ;;  %p512_p9 = scmp.lt.u32.totalorder %s510_s9, %s505_s6 }
  0x19   : > { %p514_p10 = scmp.lt.u32.totalorder %s505_s6, %s121_s29 }
  0x1a   : > { %p507_p1 = pneg %p746_p13  ;;  %p513_p12 = por %p512_p9, %p511_p7 }
  0x1c   : > { %p508_p3 = pnand %p507_p1, %p506_p0  ;;  %p515_p4 = por %p514_p10, %p513_p12 }
  0x1e   : > { %p509_p5 = pneg %p508_p3 }
  0x20   : > { %p516_p8 = pnand %p515_p4, %p509_p5 }
  0x22   : > { %519 = shalt.err (!%p516_p8)
}
  0x23   : > { %s520_s12 = scalar_lea.vmem %s124_s4, 128  ;;  %p528_p2 = scmp.lt.s32.totalorder %s124_s4, %s124_s4 }
  0x24   : > { %p521_p6 = scmp.ne.s32.totalorder %s124_s4, %s520_s12  ;;  %p529_p11 = scmp.lt.s32.totalorder %s520_s12, %s520_s12 }
  0x26   : > { %p523_p0 = pnand %p521_p6, %p507_p1  ;;  %p530_p7 = por %p529_p11, %p528_p2 }
  0x28   : > { %p524_p3 = pneg %p523_p0 }
  0x2a   : > { %p531_p9 = pnand %p530_p7, %p524_p3 }
  0x2c   : > { %534 = shalt.err (!%p531_p9)
}
  0x2d   : > { %435 = dma.hbm_to_vmem [thread:$0]  (!%p746_p13), %s121_s29, 128, %s124_s4, [#allocation8]  }
  0x2e   : > { %s767_s13 = sadd.s32 1, %s655_s19   ;;  %s28_s14 = sadd.s32 1, %s651_s18 }
  0x2f   : > { %s25_s20 = ssub.s32 %s655_s19, %s767_s13  ;;  %p35_p2 = scmp.ne.s32.totalorder %s651_s18, %s647_s17 }
  0x30   : > { %p26_p4 = scmp.eq.s32.totalorder %s25_s20, 0  ;;  %p36_p6 = scmp.eq.s32.totalorder %s655_s19, 0 }
  0x31   : > { %p938_p8 = scmp.eq.s32.totalorder %s712_s0, 1  ;;  %p444_p11 = scmp.lt.s32.totalorder %s655_s19, 2 }
  0x32   : > { %s783_s26 = scalar_select %p26_p4, %s651_s18, %s28_s14  }
  0x33   : > { %p777_p10 = por %p938_p8, %p35_p2  ;;  %p37_p1 = por %p36_p6, %p35_p2 }
  0x34   : > { %s134_s27 = sand.u32 1, %s651_s18   ;;  %s424_s29 = sshll.u32 %s655_s19, 10 }
  0x35   : > { %s412_s28 = sshll.u32 %s134_s27, 6  ;;  %s790_s5 = scalar_lea.hbm %s926_s1, %s424_s29 }
  0x36   : > { %s138_s6 = scalar_lea.vmem [#allocation4], %s412_s28  ;;  %p794_p13 = pnand %p444_p11, %p37_p1 }
  0x37   : > { %s146_s7 = sshll.u32 %s138_s6, 4  ;;  %s135_s9 = scalar_lea.sflag [#allocation5], %s134_s27  ;;  %s792_s7 = int_to_ptr.vmem [resolvable:$true] %s146_s7 }
  0x38   : > { %s535_s10 = scalar_lea.hbm %s790_s5, 1024  ;;  %p537_p12 = pneg %p794_p13 }
  0x39   : > { %p536_p5 = scmp.ne.s32.totalorder %s790_s5, %s535_s10  ;;  %s540_s14 = scalar_lea.hbm %s926_s1, 2048 }
  0x3a   : > { %p541_p7 = scmp.lt.u32.totalorder %s790_s5, %s926_s1  ;;  %p542_p9 = scmp.lt.u32.totalorder %s540_s14, %s535_s10 }
  0x3b   : > { %p538_p0 = pnand %p537_p12, %p536_p5  ;;  %p544_p4 = scmp.lt.u32.totalorder %s535_s10, %s790_s5 }
  0x3c   : > { %p543_p2 = por %p542_p9, %p541_p7 }
  0x3d   : > { %p539_p3 = pneg %p538_p0 }
  0x3e   : > { %p545_p6 = por %p544_p4, %p543_p2 }
  0x40   : > { %p546_p8 = pnand %p545_p6, %p539_p3 }
  0x42   : > { %549 = shalt.err (!%p546_p8)
}
  0x43   : > { %s550_s27 = scalar_lea.vmem %s792_s7, 1024  ;;  %s658_s29 = smov [#allocation4]  }
  0x44   : > { %p551_p11 = scmp.ne.s32.totalorder %s792_s7, %s550_s27  ;;  %s555_s30 = sshll.u32 %s658_s29, 4  ;;  %s556_s30 = int_to_ptr.vmem [resolvable:$false] %s555_s30 }
  0x45   : > { %s557_s4 = scalar_lea.vmem %s556_s30, 2048  ;;  %p558_p0 = scmp.lt.s32.totalorder %s792_s7, %s556_s30 }
  0x46   : > { %p553_p1 = pnand %p551_p11, %p537_p12  ;;  %p559_p7 = scmp.lt.s32.totalorder %s557_s4, %s550_s27 }
  0x48   : > { %p554_p5 = pneg %p553_p1  ;;  %p560_p9 = por %p559_p7, %p558_p0 }
  0x4a   : > { %p561_p2 = pnand %p560_p9, %p554_p5 }
  0x4c   : > { %564 = shalt.err (!%p561_p2)
}
  0x4d   : > { %439 = dma.hbm_to_vmem [thread:$0]  (!%p794_p13), %s790_s5, 1024, %s792_s7, %s135_s9  }
  0x4e   : > { %p941_p3 = scmp.ne.s32.totalorder %s936_s25, 0 }
  0x4f   : > { %s826_s6 = sand.u32 (!%p941_p3), 1, %s647_s17   ;;  %p942_p12 = scmp.ne.s32.totalorder (!%p941_p3), %s933_s22, 0 }
  0x50   : > { %155 = sbr.rel (%p941_p3) target bundleno = 294 (0x126), region = 28  ;;  %s416_s10 = sshll.u32 (!%p941_p3), %s826_s6, 6 }
  0x51   : > { %s158_s11 = scalar_lea.sflag (!%p941_p3), [#allocation5], %s826_s6  ;;  %s161_s12 = scalar_lea.vmem (!%p941_p3), [#allocation4], %s416_s10 }
  0x57   : > { %622 = dma.done.wait (%p942_p12), %s158_s11, 1024  }
  0x58   : > { %624 = vsyncadd (%p942_p12), %s158_s11, 4294966272  ;;  %p943_p13 = scmp.ne.s32.totalorder %s934_s23, 0 }
  0x5a   : > { %626 = dma.done.wait (%p943_p13), [#allocation8], 128  }
  0x5b   : > { %628 = vsyncadd (%p943_p13), [#allocation8], 4294967168  ;;  %v840_v0 = vld [vmem:[%s161_s12] sm:$0xff]  ;;  %v842_v1 = vld [vmem:[%s161_s12 + $0x8] sm:$0xff]  ;;  %v246_v36 = vlaneseq  ;;  %s425_s22 = sshll.u32 %s712_s0, 10  ;;  %s185_s23 = scalar_lea.vmem [#allocation9], %s416_s10 }
  0x5c   : > { %v844_v2 = vld [vmem:[%s161_s12 + $0x10] sm:$0xff]  ;;  %v195_v3 = vadd.f32 %v842_v1, %v840_v0  ;;  %v204_v4 = vmul.f32 %v840_v0, %v840_v0  ;;  %v205_v5 = vmul.f32 %v842_v1, %v842_v1  ;;  %v854_v7 = vld [vmem:[%s161_s12 + $0x18] sm:$0xff]  ;;  %v859_v11 = vld [vmem:[%s161_s12 + $0x20] sm:$0xff]  ;;  %s325_s25 = sshll.u32 %s185_s23, 4  ;;  %s876_s0 = scalar_lea.hbm %s928_s3, %s425_s22  ;;  %s878_s25 = int_to_ptr.vmem [resolvable:$true] %s325_s25 }
  0x5d   : > { %v206_v6 = vmul.f32 %v844_v2, %v844_v2  ;;  %v207_v9 = vmul.f32 %v854_v7, %v854_v7  ;;  %v208_v13 = vmul.f32 %v859_v11, %v859_v11  ;;  %v192_v15 = vld [vmem:[%s161_s12 + $0x28] sm:$0xff]  ;;  %v193_v19 = vld [vmem:[%s161_s12 + $0x30] sm:$0xff]  ;;  %v194_v23 = vld [vmem:[%s161_s12 + $0x38] sm:$0xff]  ;;  %v247_v39 = vshrl.u32 %v246_v36, 7  ;;  %s311_s8 = scalar_lea.sflag [#allocation6], %s826_s6  ;;  %s565_s9 = scalar_lea.vmem %s878_s25, 1024 }
  0x5e   : > { %v196_v8 = vadd.f32 %v195_v3, %v844_v2  ;;  %v212_v10 = vadd.f32 %v205_v5, %v204_v4  ;;  %v209_v17 = vmul.f32 %v192_v15, %v192_v15  ;;  %v210_v21 = vmul.f32 %v193_v19, %v193_v19  ;;  %v228_v44 = vld [vmem:[#allocation7] sm:$0xff]  ;;  %p566_p4 = scmp.ne.s32.totalorder %s878_s25, %s565_s9  ;;  %s659_s14 = smov [#allocation9]  }
  0x5f   : > { %v211_v25 = vmul.f32 %v194_v23, %v194_v23  ;;  %v248_v40 = vsub.s32 0, %v247_v39  ;;  %v252_v41 = vsub.s32 1, %v247_v39  ;;  %v256_v42 = vsub.s32 2, %v247_v39  ;;  %s569_s20 = sshll.u32 %s659_s14, 4  ;;  %s570_s20 = int_to_ptr.vmem [resolvable:$false] %s569_s20 }
  0x60   : > { %v197_v12 = vadd.f32 %v196_v8, %v854_v7  ;;  %v213_v14 = vadd.f32 %v212_v10, %v206_v6  ;;  %v260_v43 = vsub.s32 3, %v247_v39  ;;  %v264_v45 = vsub.s32 4, %v247_v39  ;;  %p567_p6 = pnand %p566_p4, %p777_p10  ;;  %s571_s28 = scalar_lea.vmem %s570_s20, 2048 }
  0x61   : > { %v268_v46 = vsub.s32 5, %v247_v39  ;;  %v272_v47 = vsub.s32 6, %v247_v39  ;;  %v276_v48 = vsub.s32 7, %v247_v39  ;;  %v249_v49 = vrot.slane %v228_v44, %v248_v40  ;;  %p572_p11 = scmp.lt.s32.totalorder %s878_s25, %s570_s20  ;;  %p573_p1 = scmp.lt.s32.totalorder %s571_s28, %s565_s9 }
  0x62   : > { %v198_v16 = vadd.f32 %v197_v12, %v859_v11  ;;  %v214_v18 = vadd.f32 %v213_v14, %v207_v9  ;;  %v253_v50 = vrot.slane %v228_v44, %v252_v41  ;;  %v257_v51 = vrot.slane %v228_v44, %v256_v42  ;;  %p568_p8 = pneg %p567_p6 }
  0x63   : > { %v261_v52 = vrot.slane %v228_v44, %v260_v43  ;;  %v265_v53 = vrot.slane %v228_v44, %v264_v45  ;;  %v269_v54 = vrot.slane %v228_v44, %v268_v46  ;;  %v273_v55 = vrot.slane %v228_v44, %v272_v47  ;;  %p574_p5 = por %p573_p1, %p572_p11 }
  0x64   : > { %v199_v20 = vadd.f32 %v198_v16, %v192_v15  ;;  %v215_v22 = vadd.f32 %v214_v18, %v208_v13  ;;  %v277_v56 = vrot.slane %v228_v44, %v276_v48 }
  0x65   : > { %p575_p0 = pnand %p574_p5, %p568_p8 }
  0x66   : > { %v200_v24 = vadd.f32 %v199_v20, %v193_v19  ;;  %v216_v26 = vadd.f32 %v215_v22, %v209_v17 }
  0x68   : > { %v201_v27 = vadd.f32 %v200_v24, %v194_v23  ;;  %v217_v28 = vadd.f32 %v216_v26, %v210_v21 }
  0x6a   : > { %202 = vadd.xlane.f32.xlu0 %v201_v27  ;;  %v218_v29 = vadd.f32 %v217_v28, %v211_v25 }
  0x6e   : > { %219 = vadd.xlane.f32.xlu0 %v218_v29 }
  0xf7   : > { %v203_v30 = vpop.xlane.xlu0 %202 }
  0xf8   : > { %v221_v31 = vmul.f32 0.0009765625, %v203_v30 }
  0xfa   : > { %v223_v33 = vmul.f32 %v221_v31, %v221_v31  ;;  %v229_v57 = vsub.f32 %v840_v0, %v221_v31  ;;  %v230_v58 = vsub.f32 %v842_v1, %v221_v31  ;;  %v231_v59 = vsub.f32 %v844_v2, %v221_v31 }
  0xfb   : > { %v220_v32 = vpop.xlane.xlu0 %219  ;;  %v232_v60 = vsub.f32 %v854_v7, %v221_v31  ;;  %v233_v62 = vsub.f32 %v859_v11, %v221_v31  ;;  %v234_v63 = vsub.f32 %v192_v15, %v221_v31  ;;  %v235_v3 = vsub.f32 %v193_v19, %v221_v31 }
  0xfc   : > { %v222_v34 = vmul.f32 0.0009765625, %v220_v32  ;;  %v236_v4 = vsub.f32 %v194_v23, %v221_v31 }
  0xfe   : > { %v224_v35 = vsub.f32 %v222_v34, %v223_v33 }
 0x100   : > { %v225_v37 = vmax.f32 %v224_v35, 0.0 }
 0x102   : > { %v226_v38 = vadd.f32 1e-05, %v225_v37 }
 0x104   : > { %503 = vrsqrt.f32 %v226_v38 }
 0x10e   : > { %v504_v61 = vpop.eup %503 }
 0x10f   : > { %v237_v5 = vmul.f32 %v504_v61, %v229_v57  ;;  %v238_v6 = vmul.f32 %v504_v61, %v230_v58  ;;  %v239_v8 = vmul.f32 %v504_v61, %v231_v59  ;;  %v240_v9 = vmul.f32 %v504_v61, %v232_v60 }
 0x110   : > { %v241_v10 = vmul.f32 %v504_v61, %v233_v62  ;;  %v242_v0 = vmul.f32 %v504_v61, %v234_v63  ;;  %v243_v12 = vmul.f32 %v504_v61, %v235_v3  ;;  %v244_v1 = vmul.f32 %v504_v61, %v236_v4 }
 0x111   : > { %v286_v13 = vsub.f32 %v237_v5, %v249_v49  ;;  %v287_v2 = vsub.f32 %v238_v6, %v253_v50  ;;  %v288_v14 = vsub.f32 %v239_v8, %v257_v51  ;;  %v289_v7 = vsub.f32 %v240_v9, %v261_v52 }
 0x112   : > { %v290_v11 = vsub.f32 %v241_v10, %v265_v53  ;;  %v291_v15 = vsub.f32 %v242_v0, %v269_v54  ;;  %v292_v16 = vsub.f32 %v243_v12, %v273_v55  ;;  %v293_v17 = vsub.f32 %v244_v1, %v277_v56 }
 0x113   : > { %v294_v18 = vmax.f32 %v286_v13, 0.0  ;;  %v295_v19 = vmax.f32 %v287_v2, 0.0  ;;  %v296_v20 = vmax.f32 %v288_v14, 0.0  ;;  %v297_v21 = vmax.f32 %v289_v7, 0.0 }
 0x114   : > { %v298_v22 = vmax.f32 %v290_v11, 0.0  ;;  %v299_v23 = vmax.f32 %v291_v15, 0.0  ;;  %v300_v24 = vmax.f32 %v292_v16, 0.0  ;;  %v301_v25 = vmax.f32 %v293_v17, 0.0 }
 0x115   : > { %302 = vst [vmem:[%s185_s23] sm:$0xff] %v294_v18  ;;  %303 = vst [vmem:[%s185_s23 + $0x8] sm:$0xff] %v295_v19 }
 0x116   : > { %304 = vst [vmem:[%s185_s23 + $0x10] sm:$0xff] %v296_v20  ;;  %305 = vst [vmem:[%s185_s23 + $0x18] sm:$0xff] %v297_v21 }
 0x117   : > { %306 = vst [vmem:[%s185_s23 + $0x20] sm:$0xff] %v298_v22  ;;  %307 = vst [vmem:[%s185_s23 + $0x28] sm:$0xff] %v299_v23 }
 0x118   : > { %308 = vst [vmem:[%s185_s23 + $0x30] sm:$0xff] %v300_v24  ;;  %309 = vst [vmem:[%s185_s23 + $0x38] sm:$0xff] %v301_v25 }
 0x119   : > { %578 = shalt.err (!%p575_p0)
}
 0x11a   : > { %s579_s27 = scalar_lea.hbm %s876_s0, 1024  ;;  %s583_s4 = scalar_lea.hbm %s928_s3, 2048 }
 0x11b   : > { %p580_p7 = scmp.ne.s32.totalorder %s876_s0, %s579_s27  ;;  %p584_p3 = scmp.lt.u32.totalorder %s876_s0, %s928_s3 }
 0x11c   : > { %p585_p12 = scmp.lt.u32.totalorder %s583_s4, %s579_s27  ;;  %p587_p4 = scmp.lt.u32.totalorder %s579_s27, %s876_s0 }
 0x11d   : > { %p581_p9 = pnand %p580_p7, %p777_p10 }
 0x11e   : > { %p586_p13 = por %p585_p12, %p584_p3 }
 0x11f   : > { %p582_p2 = pneg %p581_p9 }
 0x120   : > { %p588_p6 = por %p587_p4, %p586_p13 }
 0x122   : > { %p589_p8 = pnand %p588_p6, %p582_p2 }
 0x124   : > { %592 = shalt.err (!%p589_p8)
}
 0x125   : > { %430 = dma.vmem_to_hbm [thread:$0]  (%p777_p10), %s878_s25, 1024, %s876_s0, %s311_s8  }
 0x126 PF: > { %s337_s11 = sand.u32 1, %s643_s16   ;;  %p944_p11 = scmp.ne.s32.totalorder %s935_s24, 0 }
 0x127   : > { %p945_p1 = scmp.ge.s32.totalorder %s655_s19, 2  ;;  %s338_s12 = scalar_lea.sflag [#allocation6], %s337_s11 }
 0x129   : > { %p441_p5 = pnand %p945_p1, %p944_p11 }
 0x12b   : > { %630 = dma.done.wait (!%p441_p5), %s338_s12, 1024  }
 0x12c   : > { %632 = vsyncadd (!%p441_p5), %s338_s12, 4294966272  ;;  %p18_p0 = scmp.ge.s32.totalorder %s767_s13, 4   ;;  %s946_s14 = smov %s639_s15 }
 0x12d   : > { %s911_s15 = smov 0   ;;  %s947_s16 = smov %s647_s17 }
 0x12e   : > { %s948_s17 = smov %s651_s18  ;;  %s949_s18 = smov %s783_s26 }
 0x12f   : > { %s950_s19 = smov %s767_s13  ;;  %20 = sbr.rel (!%p18_p0) target bundleno = 9 (0x9), region = 78 }
 0x136   :  { %343 = vsyncpa [#allocation5], 1 }
 0x137   :  { %345 = vsyncpa [#allocation5 + $0x1], 1 }
 0x138   :  { %346 = vsyncpa [#allocation8], 1 }
 0x139   :  { %347 = vsyncpa [#allocation6], 1 }
 0x13a   :  { %349 = vsyncpa [#allocation6 + $0x1], 1 }

</bundles_post_ra>
